<compile_context>
chip_gen: v7x
topology: tpu7x:2x2x1
jax: 0.10.0
libtpu: 0.0.40
codegen_flags: <defaults>
</compile_context>

<pallas_src>
import jax
import jax.numpy as jnp
from jax.experimental import pallas as pl
from jax.experimental.pallas import tpu as pltpu


def _round_up(x, m):
    return (x + m - 1) // m * m


def _vmem_capacity_bytes():
    """Physical VMEM per TensorCore, with a conservative (v7x) fallback."""
    try:
        info = pltpu.get_tpu_info()
        cap = getattr(info, "vmem_capacity_bytes", None)
        if cap:
            return int(cap)
    except Exception:
        pass
    return 64 * 1024 * 1024


def _choose_tile_m(batch, d, x_itemsize, w_itemsize, vmem_budget):
    """Pick the batch tile: W + bias stay resident (single-buffered), x/out are
    double-buffered, and ~3 live f32 intermediates (scores/e/p) are budgeted."""
    resident = d * d * w_itemsize + d * 4              # W (1 buffer) + bias row
    avail = max(vmem_budget - resident, 2 * 1024 * 1024)
    per_row = (2 * d * x_itemsize          # x tile, double-buffered
               + 2 * d * x_itemsize        # out tile, double-buffered
               + 3 * d * 4)                # f32 scores / exp / probs live at once
    tm_cap = max((avail // per_row) // 8 * 8, 8)
    if batch <= 16:
        tm = _round_up(batch, 8)                       # one tile for tiny batches
    else:
        tm = 512                                       # amortize ~0.35us/step, near HBM roofline
        # Keep >= 2 tiles so dimension_semantics=("parallel",) can shard the
        # batch across both v7x TensorCores (harmless on single-TC v5e/v6e).
        tm = min(tm, _round_up(pl.cdiv(batch, 2), 8))
    return int(max(8, min(tm, tm_cap)))


def _attention_kernel(bias_ref, x_ref, w_ref, o_ref):
    # bias_ref: (1, D) f32 resident; x_ref: (TM, D) pipelined; w_ref: (D, D) resident.
    x = x_ref[...]
    scores = jnp.dot(x, w_ref[...], preferred_element_type=jnp.float32)  # MXU, f32 acc
    scores = scores + bias_ref[...]            # constant row: +bias_strength at bias_idx
    # Numerically stable softmax over the last axis, all math in f32
    # (v5e VPU/EUP have no bf16).
    m = jnp.max(scores, axis=-1, keepdims=True)
    e = jnp.exp(scores - m)
    denom = jnp.sum(e, axis=-1, keepdims=True)
    p = e * pl.reciprocal(denom, approx=True)  # EUP vrcp; VPU slots stay free
    o_ref[...] = (p * x.astype(jnp.float32)).astype(o_ref.dtype)


def attention_forward(x, w, *, bias_feature_idx=1, bias_strength=10.0,
                      use_bf16_matmul=False):
    """x: (batch, input_dim); w: (input_dim, input_dim). Returns softmax(x@W + bias) * x."""
    batch, input_dim = x.shape
    assert w.shape == (input_dim, input_dim)
    assert 0 <= int(bias_feature_idx) < input_dim

    # Optional: feed the MXU bf16 operands (v6e/v7x native); output stays x.dtype.
    if use_bf16_matmul:
        x_in = x.astype(jnp.bfloat16)
        w_in = w.astype(jnp.bfloat16)
    else:
        x_in, w_in = x, w

    x_itemsize = jnp.dtype(x_in.dtype).itemsize
    w_itemsize = jnp.dtype(w_in.dtype).itemsize

    cap = _vmem_capacity_bytes()
    vmem_budget = min(cap // 2, 64 * 1024 * 1024)       # 32 MiB (v7x) / 64 MiB (v5e,v6e)
    vmem_limit = min(cap * 3 // 4, 96 * 1024 * 1024)    # 48 MiB (v7x) / 96 MiB (v5e,v6e)

    tm = _choose_tile_m(batch, input_dim, x_itemsize, w_itemsize, vmem_budget)
    grid_m = pl.cdiv(batch, tm)

    # Constant bias row folded into the scores with a single VPU add (no iota/select
    # per tile).  Always f32 so the score accumulator stays f32.
    bias_row = jnp.zeros((1, input_dim), jnp.float32).at[0, int(bias_feature_idx)].set(
        jnp.float32(bias_strength))

    cost = pl.CostEstimate(
        flops=2 * batch * input_dim * input_dim,
        transcendentals=batch * input_dim,
        bytes_accessed=2 * batch * input_dim * x_itemsize
                       + input_dim * input_dim * w_itemsize
                       + input_dim * 4,
    )

    # TODO(synk): if input_dim grows so large that W no longer fits resident in
    # VMEM (~2.8K f32 on v7x after budgeting), tile W's column axis and switch
    # the softmax to the online (flash-style) m/l/acc form.
    def _call(single_buffer_resident):
        if single_buffer_resident:
            # Resident operands: constant index_map -> no reason to double-buffer.
            bias_spec = pl.BlockSpec((1, input_dim), lambda i: (0, 0),
                                     pipeline_mode=pl.Buffered(1))
            w_spec = pl.BlockSpec((input_dim, input_dim), lambda i: (0, 0),
                                  pipeline_mode=pl.Buffered(1))
        else:
            bias_spec = pl.BlockSpec((1, input_dim), lambda i: (0, 0))
            w_spec = pl.BlockSpec((input_dim, input_dim), lambda i: (0, 0))
        return pl.pallas_call(
            _attention_kernel,
            out_shape=jax.ShapeDtypeStruct((batch, input_dim), x.dtype),
            grid=(grid_m,),
            in_specs=[
                bias_spec,                                           # bias row (resident)
                pl.BlockSpec((tm, input_dim), lambda i: (i, 0)),     # x tile (pipelined)
                w_spec,                                              # W (resident)
            ],
            out_specs=pl.BlockSpec((tm, input_dim), lambda i: (i, 0)),
            compiler_params=pltpu.CompilerParams(
                dimension_semantics=("parallel",),   # shard batch tiles across TCs (v7x)
                vmem_limit_bytes=int(vmem_limit),
            ),
            cost_estimate=cost,
        )(bias_row, x_in, w_in)

    try:
        return _call(True)
    except Exception:
        # Fallback for Pallas versions where pipeline_mode=pl.Buffered(1) on a
        # constant-index (resident) operand is rejected: default double-buffered
        # specs (same as the previously-validated kernel).
        return _call(False)


if __name__ == "__main__":
    key = jax.random.PRNGKey(0)
    k_x, k_w = jax.random.split(key)

    batch, input_dim = 8, 32
    x = jax.random.normal(k_x, (batch, input_dim), dtype=jnp.float32)
    # Deterministic stand-in for nn.Parameter(torch.randn(input_dim, input_dim)).
    w = jax.random.normal(k_w, (input_dim, input_dim), dtype=jnp.float32)

    out = attention_forward(x, w, bias_feature_idx=1, bias_strength=10.0)
    out = jax.block_until_ready(out)

    # Pure-JAX reference check.
    scores = x @ w
    scores = scores.at[:, 1].add(10.0)
    ref = jax.nn.softmax(scores, axis=-1) * x
    assert jnp.allclose(out, ref, atol=2e-3, rtol=2e-3), "mismatch vs reference"

    print("KERNEL_OK")
</pallas_src>

<mosaic_0001>
module attributes {stable_mosaic.version = 11 : i64} {
  func.func @_attention_kernel(%arg0: i32, %arg1: memref<1x32xf32, #tpu.memory_space<vmem>>, %arg2: memref<8x32xf32, #tpu.memory_space<vmem>>, %arg3: memref<32x32xf32, #tpu.memory_space<vmem>>, %arg4: memref<8x32xf32, #tpu.memory_space<vmem>>) attributes {dimension_semantics = [#tpu.dimension_semantics<parallel>], iteration_bounds = array<i64: 1>, scalar_prefetch = 0 : i64, scratch_operands = 0 : i64, tpu.core_type = #tpu.core_type<tc>, window_params = [{pipeline_mode = #tpu.pipeline_mode<synchronous>, transform_indices = @transform_0, window_bounds = array<i64: 1, 32>}, {transform_indices = @transform_1, window_bounds = array<i64: 8, 32>}, {pipeline_mode = #tpu.pipeline_mode<synchronous>, transform_indices = @transform_2, window_bounds = array<i64: 32, 32>}, {transform_indices = @transform_3, window_bounds = array<i64: 8, 32>}]} {
    %c0 = arith.constant 0 : index
    %c0_0 = arith.constant 0 : index
    %0 = vector.load %arg2[%c0, %c0_0] : memref<8x32xf32, #tpu.memory_space<vmem>>, vector<8x32xf32>
    %c0_1 = arith.constant 0 : index
    %c0_2 = arith.constant 0 : index
    %1 = vector.load %arg3[%c0_1, %c0_2] : memref<32x32xf32, #tpu.memory_space<vmem>>, vector<32x32xf32>
    %cst = arith.constant dense<0.000000e+00> : vector<8x32xf32>
    %2 = tpu.matmul %0, %1, %cst {dimension_numbers = #tpu.dot_dimension_numbers<[1], [0], [0], [1], [0, 0, 1, 1], [], []>} : vector<8x32xf32>, vector<32x32xf32>, vector<8x32xf32> -> vector<8x32xf32>
    %c0_3 = arith.constant 0 : index
    %c0_4 = arith.constant 0 : index
    %3 = vector.load %arg1[%c0_3, %c0_4] : memref<1x32xf32, #tpu.memory_space<vmem>>, vector<1x32xf32>
    %4 = vector.broadcast %3 : vector<1x32xf32> to vector<8x32xf32>
    %5 = arith.addf %2, %4 : vector<8x32xf32>
    %cst_5 = arith.constant dense<0xFF800000> : vector<8xf32>
    %6 = vector.multi_reduction <maximumf>, %5, %cst_5 [1] : vector<8x32xf32> to vector<8xf32>
    %7 = vector.shape_cast %6 : vector<8xf32> to vector<8x1xf32>
    %8 = vector.broadcast %7 : vector<8x1xf32> to vector<8x32xf32>
    %9 = arith.subf %5, %8 : vector<8x32xf32>
    %10 = math.exp %9 : vector<8x32xf32>
    %cst_6 = arith.constant dense<0.000000e+00> : vector<8xf32>
    %11 = vector.multi_reduction <add>, %10, %cst_6 [1] : vector<8x32xf32> to vector<8xf32>
    %12 = vector.shape_cast %11 : vector<8xf32> to vector<8x1xf32>
    %13 = tpu.reciprocal %12 {approx = true} : vector<8x1xf32> -> vector<8x1xf32>
    %14 = vector.broadcast %13 : vector<8x1xf32> to vector<8x32xf32>
    %15 = arith.mulf %10, %14 : vector<8x32xf32>
    %16 = arith.mulf %15, %0 : vector<8x32xf32>
    %c0_7 = arith.constant 0 : index
    %c0_8 = arith.constant 0 : index
    %17 = vector.load %arg4[%c0_7, %c0_8] : memref<8x32xf32, #tpu.memory_space<vmem>>, vector<8x32xf32>
    tpu.vector_store %arg4[%c0_7, %c0_8], %16 {strides = array<i32>} : memref<8x32xf32, #tpu.memory_space<vmem>>, vector<8x32xf32>,
    return
  }
  func.func @transform_0(%arg0: i32) -> (i32, i32) {
    %c0_i32 = arith.constant 0 : i32
    %c0_i32_0 = arith.constant 0 : i32
    %c0_i32_1 = arith.constant 0 : i32
    return %c0_i32, %c0_i32_0 : i32, i32
  }
  func.func @transform_1(%arg0: i32) -> (i32, i32) {
    %c0_i32 = arith.constant 0 : i32
    %c0_i32_0 = arith.constant 0 : i32
    return %arg0, %c0_i32 : i32, i32
  }
  func.func @transform_2(%arg0: i32) -> (i32, i32) {
    %c0_i32 = arith.constant 0 : i32
    %c0_i32_0 = arith.constant 0 : i32
    %c0_i32_1 = arith.constant 0 : i32
    return %c0_i32, %c0_i32_0 : i32, i32
  }
  func.func @transform_3(%arg0: i32) -> (i32, i32) {
    %c0_i32 = arith.constant 0 : i32
    %c0_i32_0 = arith.constant 0 : i32
    return %arg0, %c0_i32 : i32, i32
  }
}

module attributes {stable_mosaic.version = 11 : i64} {
  func.func @_attention_kernel(%arg0: i32, %arg1: memref<1x32xf32, #tpu.memory_space<vmem>>, %arg2: memref<8x32xf32, #tpu.memory_space<vmem>>, %arg3: memref<32x32xf32, #tpu.memory_space<vmem>>, %arg4: memref<8x32xf32, #tpu.memory_space<vmem>>) attributes {dimension_semantics = [#tpu.dimension_semantics<parallel>], iteration_bounds = array<i64: 1>, scalar_prefetch = 0 : i64, scratch_operands = 0 : i64, tpu.core_type = #tpu.core_type<tc>, window_params = [{pipeline_mode = #tpu.pipeline_mode<synchronous>, transform_indices = @transform_0, window_bounds = array<i64: 1, 32>}, {transform_indices = @transform_1, window_bounds = array<i64: 8, 32>}, {pipeline_mode = #tpu.pipeline_mode<synchronous>, transform_indices = @transform_2, window_bounds = array<i64: 32, 32>}, {transform_indices = @transform_3, window_bounds = array<i64: 8, 32>}]} {
    %c0 = arith.constant 0 : index
    %c0_0 = arith.constant 0 : index
    %0 = vector.load %arg2[%c0, %c0_0] : memref<8x32xf32, #tpu.memory_space<vmem>>, vector<8x32xf32>
    %c0_1 = arith.constant 0 : index
    %c0_2 = arith.constant 0 : index
    %1 = vector.load %arg3[%c0_1, %c0_2] : memref<32x32xf32, #tpu.memory_space<vmem>>, vector<32x32xf32>
    %cst = arith.constant dense<0.000000e+00> : vector<8x32xf32>
    %2 = tpu.matmul %0, %1, %cst {dimension_numbers = #tpu.dot_dimension_numbers<[1], [0], [0], [1], [0, 0, 1, 1], [], []>} : vector<8x32xf32>, vector<32x32xf32>, vector<8x32xf32> -> vector<8x32xf32>
    %c0_3 = arith.constant 0 : index
    %c0_4 = arith.constant 0 : index
    %3 = vector.load %arg1[%c0_3, %c0_4] : memref<1x32xf32, #tpu.memory_space<vmem>>, vector<1x32xf32>
    %4 = vector.broadcast %3 : vector<1x32xf32> to vector<8x32xf32>
    %5 = arith.addf %2, %4 : vector<8x32xf32>
    %cst_5 = arith.constant dense<0xFF800000> : vector<8xf32>
    %6 = vector.multi_reduction <maximumf>, %5, %cst_5 [1] : vector<8x32xf32> to vector<8xf32>
    %7 = vector.shape_cast %6 : vector<8xf32> to vector<8x1xf32>
    %8 = vector.broadcast %7 : vector<8x1xf32> to vector<8x32xf32>
    %9 = arith.subf %5, %8 : vector<8x32xf32>
    %10 = math.exp %9 : vector<8x32xf32>
    %cst_6 = arith.constant dense<0.000000e+00> : vector<8xf32>
    %11 = vector.multi_reduction <add>, %10, %cst_6 [1] : vector<8x32xf32> to vector<8xf32>
    %12 = vector.shape_cast %11 : vector<8xf32> to vector<8x1xf32>
    %13 = tpu.reciprocal %12 {approx = true} : vector<8x1xf32> -> vector<8x1xf32>
    %14 = vector.broadcast %13 : vector<8x1xf32> to vector<8x32xf32>
    %15 = arith.mulf %10, %14 : vector<8x32xf32>
    %16 = arith.mulf %15, %0 : vector<8x32xf32>
    %c0_7 = arith.constant 0 : index
    %c0_8 = arith.constant 0 : index
    %17 = vector.load %arg4[%c0_7, %c0_8] : memref<8x32xf32, #tpu.memory_space<vmem>>, vector<8x32xf32>
    tpu.vector_store %arg4[%c0_7, %c0_8], %16 {strides = array<i32>} : memref<8x32xf32, #tpu.memory_space<vmem>>, vector<8x32xf32>,
    return
  }
  func.func @transform_0(%arg0: i32) -> (i32, i32) {
    %c0_i32 = arith.constant 0 : i32
    %c0_i32_0 = arith.constant 0 : i32
    %c0_i32_1 = arith.constant 0 : i32
    return %c0_i32, %c0_i32_0 : i32, i32
  }
  func.func @transform_1(%arg0: i32) -> (i32, i32) {
    %c0_i32 = arith.constant 0 : i32
    %c0_i32_0 = arith.constant 0 : i32
    return %arg0, %c0_i32 : i32, i32
  }
  func.func @transform_2(%arg0: i32) -> (i32, i32) {
    %c0_i32 = arith.constant 0 : i32
    %c0_i32_0 = arith.constant 0 : i32
    %c0_i32_1 = arith.constant 0 : i32
    return %c0_i32, %c0_i32_0 : i32, i32
  }
  func.func @transform_3(%arg0: i32) -> (i32, i32) {
    %c0_i32 = arith.constant 0 : i32
    %c0_i32_0 = arith.constant 0 : i32
    return %arg0, %c0_i32 : i32, i32
  }
}

</mosaic_0001>

<bundles_post_ra>
// kernel: tpu_custom_call.1
= control target key start
LH: loop header
LB: loop body
LE: loop exit
PB: predicated region body
PF: predicated region fallthrough
CT: control target
= control target key end

     0   :  { %8 = vsyncpa [#allocation3], 0  ;;  %s379_s0 = inlined_call_operand.hbm [shape: f32[1,32], index: 0, kind: input, shape index: {}]   ;;  %s380_s1 = inlined_call_operand.hbm [shape: f32[8,32], index: 1, kind: input, shape index: {}]   ;;  %s381_s2 = inlined_call_operand.hbm [shape: f32[32,32], index: 2, kind: input, shape index: {}]   ;;  %s382_s3 = inlined_call_operand.hbm [shape: f32[8,32], index: 3, kind: output, shape index: {}]  }
   0x1   :  { %9 = vsyncpa [#allocation6], 0 }
   0x2   :  { %10 = vsyncpa [#allocation4], 0  ;;  %s298_s12 = smov [#allocation5]   ;;  %s299_s14 = smov [#allocation2]  }
   0x3   :  { %s27_s13 = sshll.u32 %s298_s12, 4  ;;  %s17_s15 = sshll.u32 %s299_s14, 4  ;;  %s28_s13 = int_to_ptr.vmem [resolvable:$true] %s27_s13  ;;  %s18_s15 = int_to_ptr.vmem [resolvable:$true] %s17_s15 }
   0x4   :  { %s204_s18 = scalar_lea.hbm %s380_s1, 128 }
   0x5   :  { %p205_p0 = scmp.ne.s32.totalorder %s380_s1, %s204_s18  ;;  %p208_p1 = scmp.lt.u32.totalorder %s204_s18, %s380_s1 }
   0x7   :  { %p210_p2 = pnand %p208_p1, %p205_p0 }
   0x9   :  { %213 = shalt.err (!%p210_p2)
}
   0xa   :  { %s214_s23 = scalar_lea.vmem %s28_s13, 128  ;;  %p219_p4 = scmp.lt.s32.totalorder %s28_s13, %s28_s13 }
   0xb   :  { %p215_p3 = scmp.ne.s32.totalorder %s28_s13, %s214_s23  ;;  %p220_p5 = scmp.lt.s32.totalorder %s214_s23, %s214_s23 }
   0xd   :  { %p221_p6 = por %p220_p5, %p219_p4 }
   0xf   :  { %p222_p7 = pnand %p221_p6, %p215_p3 }
  0x11   :  { %225 = shalt.err (!%p222_p7)
}
  0x12   :  { %30 = dma.hbm_to_vmem [thread:$0]  %s380_s1, 128, %s28_s13, [#allocation6]  }
  0x13   :  { %s226_s28 = scalar_lea.hbm %s379_s0, 16 }
  0x14   :  { %p227_p8 = scmp.ne.s32.totalorder %s379_s0, %s226_s28  ;;  %p230_p9 = scmp.lt.u32.totalorder %s226_s28, %s379_s0 }
  0x16   :  { %p232_p10 = pnand %p230_p9, %p227_p8 }
  0x18   :  { %235 = shalt.err (!%p232_p10)
}
  0x19   :  { %s236_s6 = scalar_lea.vmem %s18_s15, 16  ;;  %s240_s7 = scalar_lea.vmem %s18_s15, 32 }
  0x1a   :  { %p237_p11 = scmp.ne.s32.totalorder %s18_s15, %s236_s6  ;;  %p241_p12 = scmp.lt.s32.totalorder %s18_s15, %s18_s15 }
  0x1b   :  { %p242_p13 = scmp.lt.s32.totalorder %s240_s7, %s236_s6 }
  0x1d   :  { %p243_p0 = por %p242_p13, %p241_p12 }
  0x1f   :  { %p244_p1 = pnand %p243_p0, %p237_p11 }
  0x21   :  { %247 = shalt.err (!%p244_p1)
}
  0x22   :  { %20 = dma.hbm_to_vmem [thread:$0]  %s379_s0, 16, %s18_s15, [#allocation3]  }
  0x23   :  { %s300_s9 = smov [#allocation7]   ;;  %s248_s13 = scalar_lea.hbm %s381_s2, 512 }
  0x24   :  { %s36_s10 = sshll.u32 %s300_s9, 4  ;;  %p249_p2 = scmp.ne.s32.totalorder %s381_s2, %s248_s13  ;;  %s37_s10 = int_to_ptr.vmem [resolvable:$true] %s36_s10 }
  0x25   :  { %p252_p3 = scmp.lt.u32.totalorder %s248_s13, %s381_s2 }
  0x27   :  { %p254_p4 = pnand %p252_p3, %p249_p2 }
  0x29   :  { %257 = shalt.err (!%p254_p4)
}
  0x2a   :  { %s258_s19 = scalar_lea.vmem %s37_s10, 512  ;;  %p263_p6 = scmp.lt.s32.totalorder %s37_s10, %s37_s10 }
  0x2b   :  { %p259_p5 = scmp.ne.s32.totalorder %s37_s10, %s258_s19  ;;  %p264_p7 = scmp.lt.s32.totalorder %s258_s19, %s258_s19 }
  0x2d   :  { %p265_p8 = por %p264_p7, %p263_p6 }
  0x2f   :  { %p266_p9 = pnand %p265_p8, %p259_p5 }
  0x31   :  { %269 = shalt.err (!%p266_p9)
}
  0x32   :  { %s301_s0 = smov 128   ;;  %s302_s15 = smov 8  }
  0x33   :  { %42 = dma.hbm_to_vmem [thread:$0]  %s381_s2, 512, %s37_s10, [#allocation6], %s301_s0, %s301_s0, %s302_s15  }
  0x34   :  { %292 = dma.done.wait [#allocation3], 16  }
  0x35   :  { %293 = vsyncadd [#allocation3], 4294967280 }
  0x36   :  { %294 = dma.done.wait [#allocation6], 640  }
  0x37   :  { %295 = vsyncadd [#allocation6], 4294966656  ;;  %v303_v0 = vmov 0.0|0.0   ;;  %vm304_vm0 = vmmov 0   ;;  %v305_v1 = vmov 0.0   ;;  %v53_v2 = vld [vmem:[#allocation7] sm:$0xff] }
  0x38   :  { %185 = vmatprep.subr.bf16.mxu0 %v303_v0  ;;  %182 = vmatprep.mubr.msk.f32.mxu0 %vm304_vm0, %v305_v1  ;;  %v54_v3 = vld [vmem:[#allocation7 + $0x8] sm:$0xff]  ;;  %v55_v4 = vld [vmem:[#allocation7 + $0x10] sm:$0xff]  ;;  %v56_v6 = vld [vmem:[#allocation7 + $0x18] sm:$0xff]  ;;  %vm64_vm1 = vcmask 261120   ;;  %s306_s2 = smov [#allocation8]  }
  0x39   :  { %v186_v5 = vpack.c.bf16 %v54_v3, %v53_v2  ;;  %v189_v7 = vpack.c.bf16 %v56_v6, %v55_v4  ;;  %v52_v8 = vld [vmem:[#allocation5] sm:$0xff]  ;;  %v167_v9 = vld [vmem:[#allocation2] ss:$0 sm:$0xff]  ;;  %s157_s22 = sshll.u32 %s306_s2, 4  ;;  %s158_s22 = int_to_ptr.vmem [resolvable:$true] %s157_s22 }
  0x3a   :  { %s270_s23 = scalar_lea.vmem %s158_s22, 128  ;;  %p275_p11 = scmp.lt.s32.totalorder %s158_s22, %s158_s22 }
  0x3b   :  { %187 = vmatpush3.bf16.msra.mxu0 %v186_v5  ;;  %p271_p10 = scmp.ne.s32.totalorder %s158_s22, %s270_s23  ;;  %p276_p12 = scmp.lt.s32.totalorder %s270_s23, %s270_s23 }
  0x3c   :  { %188 = vmatprep.subr.bf16.mxu0 %v303_v0 }
  0x3d   :  { %p277_p13 = por %p276_p12, %p275_p11 }
  0x3f   :  { %190 = vmatpush3.bf16.msra.mxu0 %v189_v7  ;;  %p278_p0 = pnand %p277_p13, %p271_p10 }
  0x42   :  { %183 = vmatmul.mubr.msk.f32.vlgmr.msra.gmra.mrb[0].mxu0 %vm64_vm1, %v52_v8 }
 0x115   :  { %v134_v10 = vpop.f32.mrb[0].mxu0 }
 0x116   :  { %v135_v11 = vadd.f32 %v167_v9, %v134_v10  ;;  %v184_v12 = vpop.f32.mrb[1].mxu0 }
 0x118   :  { %v138_v13 = vsel %vm64_vm1, %v135_v11, -inf }
 0x119   :  { %139 = vmax.xlane.f32.xlu0 %v138_v13 }
 0x1a6   :  { %v140_v14 = vpop.xlane.xlu0 %139 }
 0x1a7   :  { %v141_v15 = vsub.f32 %v135_v11, %v140_v14 }
 0x1a9   :  { %v142_v16 = vmul.f32 1.442695, %v141_v15 }
 0x1ab   :  { %200 = vpow2.f32 %v142_v16 }
 0x1b5   :  { %v201_v17 = vpop.eup %200 }
 0x1b6   :  { %v144_v18 = vsel %vm64_vm1, %v201_v17, 0.0 }
 0x1b7   :  { %145 = vadd.xlane.f32.xlu0 %v144_v18 }
 0x244   :  { %v146_v19 = vpop.xlane.xlu0 %145 }
 0x245   :  { %202 = vrcp.f32 %v146_v19 }
 0x24f   :  { %v203_v20 = vpop.eup %202 }
 0x250   :  { %v148_v21 = vmul.f32 %v203_v20, %v201_v17 }
 0x252   :  { %v149_v22 = vmul.f32 %v148_v21, %v52_v8 }
 0x254   :  { %150 = vst.msk [vmem:[#allocation8] sm:$0xff] %vm64_vm1, %v149_v22 }
 0x255   :  { %281 = shalt.err (!%p278_p0)
}
 0x256   :  { %s282_s26 = scalar_lea.hbm %s382_s3, 128 }
 0x257   :  { %p283_p1 = scmp.ne.s32.totalorder %s382_s3, %s282_s26  ;;  %p286_p2 = scmp.lt.u32.totalorder %s282_s26, %s382_s3 }
 0x259   :  { %p288_p3 = pnand %p286_p2, %p283_p1 }
 0x25b   :  { %291 = shalt.err (!%p288_p3)
}
 0x25c   :  { %160 = dma.vmem_to_hbm [thread:$0]  %s158_s22, 128, %s382_s3, [#allocation4]  }
 0x25d   :  { %296 = dma.done.wait [#allocation4], 128  }
 0x25e   :  { %297 = vsyncadd [#allocation4], 4294967168 }
 0x25f   :  { %164 = vsyncpa [#allocation3], 1 }
 0x260   :  { %165 = vsyncpa [#allocation6], 1 }
 0x261   :  { %166 = vsyncpa [#allocation4], 1 }

// kernel: tpu_custom_call.1
= control target key start
LH: loop header
LB: loop body
LE: loop exit
PB: predicated region body
PF: predicated region fallthrough
CT: control target
= control target key end

     0   :  { %8 = vsyncpa [#allocation3], 0  ;;  %s379_s0 = inlined_call_operand.hbm [shape: f32[1,32], index: 0, kind: input, shape index: {}]   ;;  %s380_s1 = inlined_call_operand.hbm [shape: f32[8,32], index: 1, kind: input, shape index: {}]   ;;  %s381_s2 = inlined_call_operand.hbm [shape: f32[32,32], index: 2, kind: input, shape index: {}]   ;;  %s382_s3 = inlined_call_operand.hbm [shape: f32[8,32], index: 3, kind: output, shape index: {}]  }
   0x1   :  { %9 = vsyncpa [#allocation6], 0 }
   0x2   :  { %10 = vsyncpa [#allocation4], 0  ;;  %s298_s12 = smov [#allocation5]   ;;  %s299_s14 = smov [#allocation2]  }
   0x3   :  { %s27_s13 = sshll.u32 %s298_s12, 4  ;;  %s17_s15 = sshll.u32 %s299_s14, 4  ;;  %s28_s13 = int_to_ptr.vmem [resolvable:$true] %s27_s13  ;;  %s18_s15 = int_to_ptr.vmem [resolvable:$true] %s17_s15 }
   0x4   :  { %s204_s18 = scalar_lea.hbm %s380_s1, 128 }
   0x5   :  { %p205_p0 = scmp.ne.s32.totalorder %s380_s1, %s204_s18  ;;  %p208_p1 = scmp.lt.u32.totalorder %s204_s18, %s380_s1 }
   0x7   :  { %p210_p2 = pnand %p208_p1, %p205_p0 }
   0x9   :  { %213 = shalt.err (!%p210_p2)
}
   0xa   :  { %s214_s23 = scalar_lea.vmem %s28_s13, 128  ;;  %p219_p4 = scmp.lt.s32.totalorder %s28_s13, %s28_s13 }
   0xb   :  { %p215_p3 = scmp.ne.s32.totalorder %s28_s13, %s214_s23  ;;  %p220_p5 = scmp.lt.s32.totalorder %s214_s23, %s214_s23 }
   0xd   :  { %p221_p6 = por %p220_p5, %p219_p4 }
   0xf   :  { %p222_p7 = pnand %p221_p6, %p215_p3 }
  0x11   :  { %225 = shalt.err (!%p222_p7)
}
  0x12   :  { %30 = dma.hbm_to_vmem [thread:$0]  %s380_s1, 128, %s28_s13, [#allocation6]  }
  0x13   :  { %s226_s28 = scalar_lea.hbm %s379_s0, 16 }
  0x14   :  { %p227_p8 = scmp.ne.s32.totalorder %s379_s0, %s226_s28  ;;  %p230_p9 = scmp.lt.u32.totalorder %s226_s28, %s379_s0 }
  0x16   :  { %p232_p10 = pnand %p230_p9, %p227_p8 }
  0x18   :  { %235 = shalt.err (!%p232_p10)
}
  0x19   :  { %s236_s6 = scalar_lea.vmem %s18_s15, 16  ;;  %s240_s7 = scalar_lea.vmem %s18_s15, 32 }
  0x1a   :  { %p237_p11 = scmp.ne.s32.totalorder %s18_s15, %s236_s6  ;;  %p241_p12 = scmp.lt.s32.totalorder %s18_s15, %s18_s15 }
  0x1b   :  { %p242_p13 = scmp.lt.s32.totalorder %s240_s7, %s236_s6 }
  0x1d   :  { %p243_p0 = por %p242_p13, %p241_p12 }
  0x1f   :  { %p244_p1 = pnand %p243_p0, %p237_p11 }
  0x21   :  { %247 = shalt.err (!%p244_p1)
}
  0x22   :  { %20 = dma.hbm_to_vmem [thread:$0]  %s379_s0, 16, %s18_s15, [#allocation3]  }
  0x23   :  { %s300_s9 = smov [#allocation7]   ;;  %s248_s13 = scalar_lea.hbm %s381_s2, 512 }
  0x24   :  { %s36_s10 = sshll.u32 %s300_s9, 4  ;;  %p249_p2 = scmp.ne.s32.totalorder %s381_s2, %s248_s13  ;;  %s37_s10 = int_to_ptr.vmem [resolvable:$true] %s36_s10 }
  0x25   :  { %p252_p3 = scmp.lt.u32.totalorder %s248_s13, %s381_s2 }
  0x27   :  { %p254_p4 = pnand %p252_p3, %p249_p2 }
  0x29   :  { %257 = shalt.err (!%p254_p4)
}
  0x2a   :  { %s258_s19 = scalar_lea.vmem %s37_s10, 512  ;;  %p263_p6 = scmp.lt.s32.totalorder %s37_s10, %s37_s10 }
  0x2b   :  { %p259_p5 = scmp.ne.s32.totalorder %s37_s10, %s258_s19  ;;  %p264_p7 = scmp.lt.s32.totalorder %s258_s19, %s258_s19 }
  0x2d   :  { %p265_p8 = por %p264_p7, %p263_p6 }
  0x2f   :  { %p266_p9 = pnand %p265_p8, %p259_p5 }
  0x31   :  { %269 = shalt.err (!%p266_p9)
}
  0x32   :  { %s301_s0 = smov 128   ;;  %s302_s15 = smov 8  }
  0x33   :  { %42 = dma.hbm_to_vmem [thread:$0]  %s381_s2, 512, %s37_s10, [#allocation6], %s301_s0, %s301_s0, %s302_s15  }
  0x34   :  { %292 = dma.done.wait [#allocation3], 16  }
  0x35   :  { %293 = vsyncadd [#allocation3], 4294967280 }
  0x36   :  { %294 = dma.done.wait [#allocation6], 640  }
  0x37   :  { %295 = vsyncadd [#allocation6], 4294966656  ;;  %v303_v0 = vmov 0.0|0.0   ;;  %vm304_vm0 = vmmov 0   ;;  %v305_v1 = vmov 0.0   ;;  %v53_v2 = vld [vmem:[#allocation7] sm:$0xff] }
  0x38   :  { %185 = vmatprep.subr.bf16.mxu0 %v303_v0  ;;  %182 = vmatprep.mubr.msk.f32.mxu0 %vm304_vm0, %v305_v1  ;;  %v54_v3 = vld [vmem:[#allocation7 + $0x8] sm:$0xff]  ;;  %v55_v4 = vld [vmem:[#allocation7 + $0x10] sm:$0xff]  ;;  %v56_v6 = vld [vmem:[#allocation7 + $0x18] sm:$0xff]  ;;  %vm64_vm1 = vcmask 261120   ;;  %s306_s2 = smov [#allocation8]  }
  0x39   :  { %v186_v5 = vpack.c.bf16 %v54_v3, %v53_v2  ;;  %v189_v7 = vpack.c.bf16 %v56_v6, %v55_v4  ;;  %v52_v8 = vld [vmem:[#allocation5] sm:$0xff]  ;;  %v167_v9 = vld [vmem:[#allocation2] ss:$0 sm:$0xff]  ;;  %s157_s22 = sshll.u32 %s306_s2, 4  ;;  %s158_s22 = int_to_ptr.vmem [resolvable:$true] %s157_s22 }
  0x3a   :  { %s270_s23 = scalar_lea.vmem %s158_s22, 128  ;;  %p275_p11 = scmp.lt.s32.totalorder %s158_s22, %s158_s22 }
  0x3b   :  { %187 = vmatpush3.bf16.msra.mxu0 %v186_v5  ;;  %p271_p10 = scmp.ne.s32.totalorder %s158_s22, %s270_s23  ;;  %p276_p12 = scmp.lt.s32.totalorder %s270_s23, %s270_s23 }
  0x3c   :  { %188 = vmatprep.subr.bf16.mxu0 %v303_v0 }
  0x3d   :  { %p277_p13 = por %p276_p12, %p275_p11 }
  0x3f   :  { %190 = vmatpush3.bf16.msra.mxu0 %v189_v7  ;;  %p278_p0 = pnand %p277_p13, %p271_p10 }
  0x42   :  { %183 = vmatmul.mubr.msk.f32.vlgmr.msra.gmra.mrb[0].mxu0 %vm64_vm1, %v52_v8 }
 0x115   :  { %v134_v10 = vpop.f32.mrb[0].mxu0 }
 0x116   :  { %v135_v11 = vadd.f32 %v167_v9, %v134_v10  ;;  %v184_v12 = vpop.f32.mrb[1].mxu0 }
 0x118   :  { %v138_v13 = vsel %vm64_vm1, %v135_v11, -inf }
 0x119   :  { %139 = vmax.xlane.f32.xlu0 %v138_v13 }
 0x1a6   :  { %v140_v14 = vpop.xlane.xlu0 %139 }
 0x1a7   :  { %v141_v15 = vsub.f32 %v135_v11, %v140_v14 }
 0x1a9   :  { %v142_v16 = vmul.f32 1.442695, %v141_v15 }
 0x1ab   :  { %200 = vpow2.f32 %v142_v16 }
 0x1b5   :  { %v201_v17 = vpop.eup %200 }
 0x1b6   :  { %v144_v18 = vsel %vm64_vm1, %v201_v17, 0.0 }
 0x1b7   :  { %145 = vadd.xlane.f32.xlu0 %v144_v18 }
 0x244   :  { %v146_v19 = vpop.xlane.xlu0 %145 }
 0x245   :  { %202 = vrcp.f32 %v146_v19 }
 0x24f   :  { %v203_v20 = vpop.eup %202 }
 0x250   :  { %v148_v21 = vmul.f32 %v203_v20, %v201_v17 }
 0x252   :  { %v149_v22 = vmul.f32 %v148_v21, %v52_v8 }
 0x254   :  { %150 = vst.msk [vmem:[#allocation8] sm:$0xff] %vm64_vm1, %v149_v22 }
 0x255   :  { %281 = shalt.err (!%p278_p0)
}
 0x256   :  { %s282_s26 = scalar_lea.hbm %s382_s3, 128 }
 0x257   :  { %p283_p1 = scmp.ne.s32.totalorder %s382_s3, %s282_s26  ;;  %p286_p2 = scmp.lt.u32.totalorder %s282_s26, %s382_s3 }
 0x259   :  { %p288_p3 = pnand %p286_p2, %p283_p1 }
 0x25b   :  { %291 = shalt.err (!%p288_p3)
}
 0x25c   :  { %160 = dma.vmem_to_hbm [thread:$0]  %s158_s22, 128, %s382_s3, [#allocation4]  }
 0x25d   :  { %296 = dma.done.wait [#allocation4], 128  }
 0x25e   :  { %297 = vsyncadd [#allocation4], 4294967168 }
 0x25f   :  { %164 = vsyncpa [#allocation3], 1 }
 0x260   :  { %165 = vsyncpa [#allocation6], 1 }
 0x261   :  { %166 = vsyncpa [#allocation4], 1 }

</bundles_post_ra>
